<compile_context>
chip_gen: v5e
topology: v5e:2x2
jax: 0.10.0
libtpu: 0.0.40
codegen_flags: <defaults>
</compile_context>

<pallas_src>
import functools

import numpy as np
import jax
import jax.numpy as jnp
from jax.experimental import pallas as pl
from jax.experimental.pallas import tpu as pltpu


def get_node_feature_dims():
    return [119, 5, 12, 12, 10, 6, 6, 2, 2]


FEATURE_DIMS = get_node_feature_dims()
NUM_FEATURES = len(FEATURE_DIMS)          # 9
TOTAL_DIM = sum(FEATURE_DIMS)             # 174
TOTAL_PAD = 256                           # concat-table rows, lane friendly


def _round_up(v, m):
    return (v + m - 1) // m * m


# Static selector / local-column constants (FEATURE_DIMS is fixed):
#   SEL[f, c]    = 1 iff concat-table column c belongs to feature f
#   COL_LOCAL[c] = c - offset(feature(c)); -1 on padded columns (never matches)
_SEL_NP = np.zeros((NUM_FEATURES, TOTAL_PAD), np.float32)
_COL_NP = np.full((1, TOTAL_PAD), -1.0, np.float32)
_off = 0
for _f, _d in enumerate(FEATURE_DIMS):
    _SEL_NP[_f, _off:_off + _d] = 1.0
    _COL_NP[0, _off:_off + _d] = np.arange(_d, dtype=np.float32)
    _off += _d


def _node_encoder_kernel(idx_ref, sel_ref, col_ref, thi_ref, tlo_ref, out_ref):
    """idx_ref: (TN, F) bf16 categorical indices (integer-valued, exact in bf16).
    sel_ref:  (F, TOTAL_PAD) bf16 static selector matrix.
    col_ref:  (1, TOTAL_PAD) f32 static per-column local index (-1 on pads).
    thi_ref / tlo_ref: (TOTAL_PAD, EMB_PAD) bf16 hi/lo split of the f32 table.
    out_ref:  (TN, EMB_PAD) f32."""
    # gathered[n, c] = idx[n, feature(c)]  (exact integers in f32; 0 on pads)
    gathered = jnp.dot(idx_ref[...], sel_ref[...],
                       preferred_element_type=jnp.float32)
    # Multi-hot: exactly one 1 in each feature's disjoint column range.
    multi_hot = (gathered == col_ref[...]).astype(jnp.bfloat16)
    # Sum of the 9 embedding lookups == multi_hot @ table; table = hi + lo,
    # both matmuls run on the bf16 MXU and accumulate in f32.
    acc = jnp.dot(multi_hot, thi_ref[...], preferred_element_type=jnp.float32)
    acc = acc + jnp.dot(multi_hot, tlo_ref[...],
                        preferred_element_type=jnp.float32)
    out_ref[...] = acc


@functools.partial(jax.jit, static_argnames=("emb_dim", "tile_n"))
def node_encoder(x, table_hi, table_lo, *, emb_dim, tile_n=1024):
    """x: [N, 9] integer categorical indices.
    table_hi/table_lo: [TOTAL_PAD, emb_pad] bf16 hi/lo split of the concat table.
    Returns [N, emb_dim] f32, matching the PyTorch NodeEncoder.forward."""
    n, f = x.shape
    assert f == NUM_FEATURES
    emb_pad = table_hi.shape[1]

    # Big tiles amortize per-grid-step overhead; clamp for small N and pad N
    # up to a tile multiple instead of asserting divisibility.
    eff_tile = min(tile_n, _round_up(n, 16))
    n_pad = _round_up(n, eff_tile)

    # bf16 indices: values <= 118 are exact; halves index HBM/VMEM traffic and
    # feeds the selector matmul directly.
    idx = x.astype(jnp.bfloat16)
    if n_pad != n:
        idx = jnp.pad(idx, ((0, n_pad - n), (0, 0)))  # pad rows sliced below

    sel = jnp.asarray(_SEL_NP, jnp.bfloat16)
    col = jnp.asarray(_COL_NP, jnp.float32)

    out = pl.pallas_call(
        _node_encoder_kernel,
        out_shape=jax.ShapeDtypeStruct((n_pad, emb_pad), jnp.float32),
        grid_spec=pltpu.PrefetchScalarGridSpec(
            num_scalar_prefetch=0,
            grid=(n_pad // eff_tile,),
            in_specs=[
                pl.BlockSpec((eff_tile, NUM_FEATURES), lambda i: (i, 0)),
                pl.BlockSpec((NUM_FEATURES, TOTAL_PAD), lambda i: (0, 0)),
                pl.BlockSpec((1, TOTAL_PAD), lambda i: (0, 0)),
                pl.BlockSpec((TOTAL_PAD, emb_pad), lambda i: (0, 0)),
                pl.BlockSpec((TOTAL_PAD, emb_pad), lambda i: (0, 0)),
            ],
            out_specs=pl.BlockSpec((eff_tile, emb_pad), lambda i: (i, 0)),
        ),
        compiler_params=pltpu.CompilerParams(
            dimension_semantics=("parallel",)),
    )(idx, sel, col, table_hi, table_lo)

    return out[:n, :emb_dim]


def init_params(emb_dim, key):
    """Xavier-uniform init of the 9 tables (as in the PyTorch module),
    concatenated row-wise, zero-padded to (TOTAL_PAD, round_up(emb_dim,128)),
    and split into a hi/lo bf16 pair (hi + lo ~= f32 table)."""
    tables = []
    for dim in FEATURE_DIMS:
        key, sub = jax.random.split(key)
        bound = float(np.sqrt(6.0 / (dim + emb_dim)))
        tables.append(jax.random.uniform(
            sub, (dim, emb_dim), jnp.float32, minval=-bound, maxval=bound))
    concat = jnp.concatenate(tables, axis=0)                      # (174, emb)
    emb_pad = _round_up(emb_dim, 128)                             # lane-dense
    concat = jnp.pad(concat, ((0, TOTAL_PAD - TOTAL_DIM),
                              (0, emb_pad - emb_dim)))
    hi = concat.astype(jnp.bfloat16)
    lo = (concat - hi.astype(jnp.float32)).astype(jnp.bfloat16)
    return hi, lo, tables


def reference_forward(x, tables):
    """Plain-JAX reference matching the PyTorch forward (f32 tables)."""
    out = 0
    for i in range(NUM_FEATURES):
        out = out + jnp.take(tables[i], x[:, i], axis=0)
    return out


if __name__ == "__main__":
    key = jax.random.PRNGKey(0)
    emb_dim = 32
    n_nodes = 16

    table_hi, table_lo, tables = init_params(emb_dim, key)

    # Deterministic categorical node features: x[:, i] in [0, FEATURE_DIMS[i])
    key, kx = jax.random.split(key)
    cols = []
    for dim in FEATURE_DIMS:
        kx, sub = jax.random.split(kx)
        cols.append(jax.random.randint(sub, (n_nodes, 1), 0, dim, jnp.int32))
    x = jnp.concatenate(cols, axis=1)                             # (16, 9)

    out = node_encoder(x, table_hi, table_lo, emb_dim=emb_dim)
    out = jax.block_until_ready(out)

    ref = reference_forward(x, tables)
    # hi/lo bf16 table split keeps near-f32 fidelity (per-element error ~1e-6,
    # worst case ~1e-5); the MXU also reassociates the 9-term sum vs. the
    # sequential reference adds.
    np.testing.assert_allclose(np.asarray(out), np.asarray(ref),
                               rtol=1e-5, atol=2e-5)
    print("KERNEL_OK")
</pallas_src>

<mosaic_0001>
module attributes {stable_mosaic.version = 11 : i64} {
  func.func @_node_encoder_kernel(%arg0: i32, %arg1: memref<16x9xbf16, #tpu.memory_space<vmem>>, %arg2: memref<9x256xbf16, #tpu.memory_space<vmem>>, %arg3: memref<1x256xf32, #tpu.memory_space<vmem>>, %arg4: memref<256x128xbf16, #tpu.memory_space<vmem>>, %arg5: memref<256x128xbf16, #tpu.memory_space<vmem>>, %arg6: memref<16x128xf32, #tpu.memory_space<vmem>>) attributes {dimension_semantics = [#tpu.dimension_semantics<parallel>], iteration_bounds = array<i64: 1>, scalar_prefetch = 0 : i64, scratch_operands = 0 : i64, tpu.core_type = #tpu.core_type<tc>, window_params = [{transform_indices = @transform_0, window_bounds = array<i64: 16, 9>}, {pipeline_mode = #tpu.pipeline_mode<synchronous>, transform_indices = @transform_1, window_bounds = array<i64: 9, 256>}, {pipeline_mode = #tpu.pipeline_mode<synchronous>, transform_indices = @transform_2, window_bounds = array<i64: 1, 256>}, {pipeline_mode = #tpu.pipeline_mode<synchronous>, transform_indices = @transform_3, window_bounds = array<i64: 256, 128>}, {pipeline_mode = #tpu.pipeline_mode<synchronous>, transform_indices = @transform_4, window_bounds = array<i64: 256, 128>}, {transform_indices = @transform_5, window_bounds = array<i64: 16, 128>}]} {
    %c0 = arith.constant 0 : index
    %c0_0 = arith.constant 0 : index
    %0 = vector.load %arg1[%c0, %c0_0] : memref<16x9xbf16, #tpu.memory_space<vmem>>, vector<16x9xbf16>
    %c0_1 = arith.constant 0 : index
    %c0_2 = arith.constant 0 : index
    %1 = vector.load %arg2[%c0_1, %c0_2] : memref<9x256xbf16, #tpu.memory_space<vmem>>, vector<9x256xbf16>
    %cst = arith.constant dense<0.000000e+00> : vector<16x256xf32>
    %2 = tpu.matmul %0, %1, %cst {dimension_numbers = #tpu.dot_dimension_numbers<[1], [0], [0], [1], [0, 0, 1, 1], [], []>} : vector<16x9xbf16>, vector<9x256xbf16>, vector<16x256xf32> -> vector<16x256xf32>
    %c0_3 = arith.constant 0 : index
    %c0_4 = arith.constant 0 : index
    %3 = vector.load %arg3[%c0_3, %c0_4] : memref<1x256xf32, #tpu.memory_space<vmem>>, vector<1x256xf32>
    %4 = vector.broadcast %3 : vector<1x256xf32> to vector<16x256xf32>
    %5 = arith.cmpf oeq, %2, %4 : vector<16x256xf32>
    %6 = arith.extui %5 : vector<16x256xi1> to vector<16x256xi32>
    %7 = arith.sitofp %6 : vector<16x256xi32> to vector<16x256xf32>
    %8 = arith.truncf %7 : vector<16x256xf32> to vector<16x256xbf16>
    %c0_5 = arith.constant 0 : index
    %c0_6 = arith.constant 0 : index
    %9 = vector.load %arg4[%c0_5, %c0_6] : memref<256x128xbf16, #tpu.memory_space<vmem>>, vector<256x128xbf16>
    %cst_7 = arith.constant dense<0.000000e+00> : vector<16x128xf32>
    %10 = tpu.matmul %8, %9, %cst_7 {dimension_numbers = #tpu.dot_dimension_numbers<[1], [0], [0], [1], [0, 0, 1, 1], [], []>} : vector<16x256xbf16>, vector<256x128xbf16>, vector<16x128xf32> -> vector<16x128xf32>
    %c0_8 = arith.constant 0 : index
    %c0_9 = arith.constant 0 : index
    %11 = vector.load %arg5[%c0_8, %c0_9] : memref<256x128xbf16, #tpu.memory_space<vmem>>, vector<256x128xbf16>
    %cst_10 = arith.constant dense<0.000000e+00> : vector<16x128xf32>
    %12 = tpu.matmul %8, %11, %cst_10 {dimension_numbers = #tpu.dot_dimension_numbers<[1], [0], [0], [1], [0, 0, 1, 1], [], []>} : vector<16x256xbf16>, vector<256x128xbf16>, vector<16x128xf32> -> vector<16x128xf32>
    %13 = arith.addf %10, %12 : vector<16x128xf32>
    %c0_11 = arith.constant 0 : index
    %c0_12 = arith.constant 0 : index
    %14 = vector.load %arg6[%c0_11, %c0_12] : memref<16x128xf32, #tpu.memory_space<vmem>>, vector<16x128xf32>
    tpu.vector_store %arg6[%c0_11, %c0_12], %13 {strides = array<i32>} : memref<16x128xf32, #tpu.memory_space<vmem>>, vector<16x128xf32>,
    return
  }
  func.func @transform_0(%arg0: i32) -> (i32, i32) {
    %c0_i32 = arith.constant 0 : i32
    %c0_i32_0 = arith.constant 0 : i32
    return %arg0, %c0_i32 : i32, i32
  }
  func.func @transform_1(%arg0: i32) -> (i32, i32) {
    %c0_i32 = arith.constant 0 : i32
    %c0_i32_0 = arith.constant 0 : i32
    %c0_i32_1 = arith.constant 0 : i32
    return %c0_i32, %c0_i32_0 : i32, i32
  }
  func.func @transform_2(%arg0: i32) -> (i32, i32) {
    %c0_i32 = arith.constant 0 : i32
    %c0_i32_0 = arith.constant 0 : i32
    %c0_i32_1 = arith.constant 0 : i32
    return %c0_i32, %c0_i32_0 : i32, i32
  }
  func.func @transform_3(%arg0: i32) -> (i32, i32) {
    %c0_i32 = arith.constant 0 : i32
    %c0_i32_0 = arith.constant 0 : i32
    %c0_i32_1 = arith.constant 0 : i32
    return %c0_i32, %c0_i32_0 : i32, i32
  }
  func.func @transform_4(%arg0: i32) -> (i32, i32) {
    %c0_i32 = arith.constant 0 : i32
    %c0_i32_0 = arith.constant 0 : i32
    %c0_i32_1 = arith.constant 0 : i32
    return %c0_i32, %c0_i32_0 : i32, i32
  }
  func.func @transform_5(%arg0: i32) -> (i32, i32) {
    %c0_i32 = arith.constant 0 : i32
    %c0_i32_0 = arith.constant 0 : i32
    return %arg0, %c0_i32 : i32, i32
  }
}

</mosaic_0001>

<bundles_post_ra>
// kernel: node_encoder.1
= control target key start
LH: loop header
LB: loop body
LE: loop exit
PB: predicated region body
PF: predicated region fallthrough
CT: control target
= control target key end

     0   :  { %10 = vsyncpa [#allocation3], 0  ;;  %s809_s0 = inlined_call_operand.vmem [shape: bf16[16,9], index: 0, kind: input, shape index: {}]   ;;  %s810_s1 = inlined_call_operand.vmem [shape: bf16[9,256], index: 1, kind: input, shape index: {}]   ;;  %s811_s2 = inlined_call_operand.vmem [shape: f32[1,256], index: 2, kind: input, shape index: {}]   ;;  %s812_s3 = inlined_call_operand.hbm [shape: bf16[256,128], index: 3, kind: input, shape index: {}]   ;;  %s813_s4 = inlined_call_operand.hbm [shape: bf16[256,128], index: 4, kind: input, shape index: {}]   ;;  %s814_s5 = inlined_call_operand.hbm [shape: f32[16,128], index: 5, kind: output, shape index: {}]  }
   0x1   :  { %11 = vsyncpa [#allocation6], 0 }
   0x2   :  { %12 = vsyncpa [#allocation4], 0  ;;  %s23_s20 = sshll.u32 %s812_s3, 4  ;;  %s743_s21 = smov [#allocation2]   ;;  %s24_s20 = int_to_ptr.hbm [resolvable:$true] %s23_s20 }
   0x3   :  { %s25_s22 = sshll.u32 %s743_s21, 4  ;;  %s36_s25 = sshll.u32 %s813_s4, 4  ;;  %s26_s22 = int_to_ptr.vmem [resolvable:$true] %s25_s22  ;;  %s37_s25 = int_to_ptr.hbm [resolvable:$true] %s36_s25 }
   0x4   :  { %s744_s26 = smov 64   ;;  %s745_s27 = smov 4  }
   0x5   :  { %31 = dma.hbm_to_vmem [thread:$0]  %s24_s20, 2048, %s26_s22, [#allocation3], %s744_s26, %s744_s26, %s745_s27  }
   0x6   :  { %s746_s28 = smov [#allocation5]  }
   0x7   :  { %s38_s29 = sshll.u32 %s746_s28, 4  ;;  %s39_s29 = int_to_ptr.vmem [resolvable:$true] %s38_s29 }
   0x8   :  { %44 = dma.hbm_to_vmem [thread:$0]  %s37_s25, 2048, %s39_s29, [#allocation6], %s744_s26, %s744_s26, %s745_s27  }
   0x9   :  { %737 = dma.done.wait [#allocation3], 2048  }
   0xa   :  { %738 = vsyncadd [#allocation3], 4294965248 }
   0xb   :  { %739 = dma.done.wait [#allocation6], 2048  }
   0xc   :  { %740 = vsyncadd [#allocation6], 4294965248  ;;  %vm75_vm0 = vcmask 1043456   ;;  %vm76_vm1 = vcmask 1044480   ;;  %v747_v0 = vmov 65535   ;;  %v647_v8 = vld [vmem:[#allocation5 + $0x38] sm:$0xff] }
   0xd   :  { %v77_v1 = vsel %vm75_vm0, 4294967295, %v747_v0  ;;  %v473_v3 = vld [vmem:[%s810_s1] sm:$0xf]  ;;  %v623_v4 = vld [vmem:[%s810_s1 + $0x4] sm:$0x10]  ;;  %v655_v10 = vld [vmem:[#allocation5 + $0x78] sm:$0xff]  ;;  %293 = vmatpush.bf16.msra.mxu2 %v647_v8 }
   0xe   :  { %v78_v2 = vsel %vm76_vm1, %v77_v1, 0  ;;  %v622_v5 = vld [vmem:[%s810_s1 + $0x4] sm:$0xf]  ;;  %v474_v6 = vor.u32 %v623_v4, %v473_v3  ;;  %v475_v7 = vld [vmem:[%s810_s1 + $0x8] sm:$0x10]  ;;  %v631_v11 = vld [vmem:[#allocation2 + $0x38] sm:$0xff]  ;;  %307 = vmatpush.bf16.msra.mxu3 %v655_v10 }
   0xf   :  { %v478_v9 = vor.u32 %v622_v5, %v475_v7  ;;  %v639_v13 = vld [vmem:[#allocation2 + $0x78] sm:$0xff]  ;;  %v646_v14 = vld [vmem:[#allocation5 + $0x30] sm:$0xff]  ;;  %v621_v16 = vld [vmem:[%s809_s0] sm:$0xff]  ;;  %vm71_vm2 = vcmask 72704   ;;  %v748_v51 = vmov 1.0|1.0  }
  0x10   :  { %v80_v12 = vand.u32 %v474_v6, %v78_v2  ;;  %v654_v17 = vld [vmem:[#allocation5 + $0x70] sm:$0xff]  ;;  %v645_v20 = vld [vmem:[#allocation5 + $0x28] sm:$0xff]  ;;  %v644_v24 = vld [vmem:[#allocation5 + $0x20] sm:$0xff]  ;;  %s453_s16 = sshll.u32 %s814_s5, 4  ;;  %s750_s17 = smov 128   ;;  %s454_s16 = int_to_ptr.hbm [resolvable:$true] %s453_s16 }
  0x11   :  { %v83_v15 = vand.u32 %v478_v9, %v78_v2  ;;  %v630_v18 = vld [vmem:[#allocation2 + $0x30] sm:$0xff]  ;;  %294 = vmatpush.bf16.msra.mxu2 %v646_v14  ;;  %v653_v21 = vld [vmem:[#allocation5 + $0x68] sm:$0xff]  ;;  %v652_v25 = vld [vmem:[#allocation5 + $0x60] sm:$0xff]  ;;  %s751_s18 = smov 8  }
  0x12   :  { %92 = vmatpush.bf16.msra.mxu0 %v80_v12  ;;  %v638_v19 = vld [vmem:[#allocation2 + $0x70] sm:$0xff]  ;;  %308 = vmatpush.bf16.msra.mxu3 %v654_v17  ;;  %v629_v22 = vld [vmem:[#allocation2 + $0x28] sm:$0xff]  ;;  %v628_v26 = vld [vmem:[#allocation2 + $0x20] sm:$0xff] }
  0x13   :  { %106 = vmatpush.bf16.msra.mxu1 %v83_v15  ;;  %v637_v23 = vld [vmem:[#allocation2 + $0x68] sm:$0xff]  ;;  %v636_v27 = vld [vmem:[#allocation2 + $0x60] sm:$0xff]  ;;  %v643_v28 = vld [vmem:[#allocation5 + $0x18] sm:$0xff] }
  0x14   :  { %v651_v29 = vld [vmem:[#allocation5 + $0x58] sm:$0xff]  ;;  %v642_v32 = vld [vmem:[#allocation5 + $0x10] sm:$0xff]  ;;  %v641_v36 = vld [vmem:[#allocation5 + $0x8] sm:$0xff] }
  0x15   :  { %479 = vmatmul.msk.bf16.vlgmr.msra.gmra.mxu0 %vm71_vm2, %v621_v16  ;;  %295 = vmatpush.bf16.msra.mxu2 %v645_v20  ;;  %v627_v30 = vld [vmem:[#allocation2 + $0x18] sm:$0xff]  ;;  %v650_v33 = vld [vmem:[#allocation5 + $0x50] sm:$0xff]  ;;  %v649_v37 = vld [vmem:[#allocation5 + $0x48] sm:$0xff] }
  0x16   :  { %417 = vmatpush.bf16.msrb.mxu0 %v631_v11  ;;  %480 = vmatmul.msk.bf16.vlgmr.msra.gmra.mxu1 %vm71_vm2, %v621_v16  ;;  %v635_v31 = vld [vmem:[#allocation2 + $0x58] sm:$0xff]  ;;  %v626_v34 = vld [vmem:[#allocation2 + $0x10] sm:$0xff]  ;;  %v625_v38 = vld [vmem:[#allocation2 + $0x8] sm:$0xff] }
  0x17   :  { %431 = vmatpush.bf16.msrb.mxu1 %v639_v13  ;;  %309 = vmatpush.bf16.msra.mxu3 %v653_v21  ;;  %v634_v35 = vld [vmem:[#allocation2 + $0x50] sm:$0xff]  ;;  %v633_v39 = vld [vmem:[#allocation2 + $0x48] sm:$0xff]  ;;  %v640_v40 = vld [vmem:[#allocation5] sm:$0xff] }
  0x18   :  { %v648_v41 = vld [vmem:[#allocation5 + $0x40] sm:$0xff] }
  0x19   :  { %296 = vmatpush.bf16.msra.mxu2 %v644_v24  ;;  %v624_v42 = vld [vmem:[#allocation2] sm:$0xff] }
  0x1a   :  { %418 = vmatpush.bf16.msrb.mxu0 %v630_v18  ;;  %v632_v43 = vld [vmem:[#allocation2 + $0x40] sm:$0xff] }
  0x1b   :  { %432 = vmatpush.bf16.msrb.mxu1 %v638_v19  ;;  %310 = vmatpush.bf16.msra.mxu3 %v652_v25  ;;  %v113_v46 = vld [vmem:[%s811_s2] sm:$0x3]  ;;  %s749_s2 = smov [#allocation7]  }
  0x1c   :  { %v115_v47 = vperm.slane %v113_v46, 0  ;;  %v116_v48 = vperm.slane %v113_v46, 1  ;;  %s451_s13 = sshll.u32 %s749_s2, 4  ;;  %s452_s13 = int_to_ptr.vmem [resolvable:$true] %s451_s13 }
  0x1d   :  { %297 = vmatpush.bf16.msra.mxu2 %v643_v28 }
  0x1e   :  { %419 = vmatpush.bf16.msrb.mxu0 %v629_v22 }
  0x1f   :  { %433 = vmatpush.bf16.msrb.mxu1 %v637_v23  ;;  %311 = vmatpush.bf16.msra.mxu3 %v651_v29 }
  0x21   :  { %298 = vmatpush.bf16.msra.mxu2 %v642_v32 }
  0x22   :  { %420 = vmatpush.bf16.msrb.mxu0 %v628_v26 }
  0x23   :  { %434 = vmatpush.bf16.msrb.mxu1 %v636_v27  ;;  %312 = vmatpush.bf16.msra.mxu3 %v650_v33 }
  0x25   :  { %299 = vmatpush.bf16.msra.mxu2 %v641_v36 }
  0x26   :  { %421 = vmatpush.bf16.msrb.mxu0 %v627_v30 }
  0x27   :  { %435 = vmatpush.bf16.msrb.mxu1 %v635_v31  ;;  %313 = vmatpush.bf16.msra.mxu3 %v649_v37 }
  0x29   :  { %300 = vmatpush.bf16.msra.mxu2 %v640_v40 }
  0x2a   :  { %422 = vmatpush.bf16.msrb.mxu0 %v626_v34 }
  0x2b   :  { %436 = vmatpush.bf16.msrb.mxu1 %v634_v35  ;;  %314 = vmatpush.bf16.msra.mxu3 %v648_v41 }
  0x2e   :  { %423 = vmatpush.bf16.msrb.mxu0 %v625_v38 }
  0x2f   :  { %437 = vmatpush.bf16.msrb.mxu1 %v633_v39 }
  0x32   :  { %424 = vmatpush.bf16.msrb.mxu0 %v624_v42 }
  0x33   :  { %438 = vmatpush.bf16.msrb.mxu1 %v632_v43 }
  0x92   :  { %v94_v44 = vpop.f32.mrf.mxu0 }
  0x93   :  { %v108_v45 = vpop.f32.mrf.mxu1  ;;  %vm119_vm3 = vcmp.eq.f32.partialorder %v94_v44, %v115_v47 }
  0x94   :  { %vm120_vm5 = vcmp.eq.f32.partialorder %v108_v45, %v116_v48 }
  0x9a   :  { %v96_v49 = vpop.f32.mrf.mxu0 }
  0x9b   :  { %vm121_vm4 = vcmp.eq.f32.partialorder %v96_v49, %v115_v47  ;;  %v110_v50 = vpop.f32.mrf.mxu1 }
  0x9c   :  { %vm549_vm6 = vmpackc.low %vm121_vm4, %vm119_vm3  ;;  %vm122_vm7 = vcmp.eq.f32.partialorder %v110_v50, %v116_v48 }
  0x9d   :  { %vm551_vm8 = vmpackc.low %vm122_vm7, %vm120_vm5  ;;  %550 = vmatmul.msk.bf16.vlgmr.msra.gmra.mxu2 %vm549_vm6, %v748_v51  ;;  %618 = vmatmul.msk.bf16.vlgmr.msrb.gmra.mxu0 %vm549_vm6, %v748_v51 }
  0x9e   :  { %552 = vmatmul.msk.bf16.vlgmr.msra.gmra.mxu3 %vm551_vm8, %v748_v51  ;;  %620 = vmatmul.msk.bf16.vlgmr.msrb.gmra.mxu1 %vm551_vm8, %v748_v51 }
 0x11a   :  { %v426_v53 = vpop.f32.mrf.mxu0 }
 0x11b   :  { %v440_v56 = vpop.f32.mrf.mxu1 }
 0x120   :  { %v302_v52 = vpop.f32.mrf.mxu2 }
 0x121   :  { %v316_v54 = vpop.f32.mrf.mxu3 }
 0x122   :  { %v317_v55 = vadd.f32 %v316_v54, %v302_v52  ;;  %v428_v62 = vpop.f32.mrf.mxu0 }
 0x123   :  { %v442_v0 = vpop.f32.mrf.mxu1 }
 0x124   :  { %v427_v57 = vadd.f32 %v426_v53, %v317_v55 }
 0x126   :  { %v441_v58 = vadd.f32 %v440_v56, %v427_v57 }
 0x128   :  { %445 = vst [vmem:[#allocation7] sm:$0xff] %v441_v58  ;;  %v304_v59 = vpop.f32.mrf.mxu2 }
 0x129   :  { %v318_v60 = vpop.f32.mrf.mxu3 }
 0x12a   :  { %v319_v61 = vadd.f32 %v318_v60, %v304_v59 }
 0x12c   :  { %v429_v63 = vadd.f32 %v428_v62, %v319_v61 }
 0x12e   :  { %v443_v1 = vadd.f32 %v442_v0, %v429_v63 }
 0x130   :  { %446 = vst [vmem:[#allocation7 + $0x8] sm:$0xff] %v443_v1 }
 0x131   :  { %459 = dma.vmem_to_hbm [thread:$0]  %s452_s13, 256, %s454_s16, [#allocation4], %s750_s17, %s750_s17, %s751_s18  }
 0x132   :  { %741 = dma.done.wait [#allocation4], 256  }
 0x133   :  { %742 = vsyncadd [#allocation4], 4294967040 }
 0x134   :  { %464 = vsyncpa [#allocation3], 1 }
 0x135   :  { %465 = vsyncpa [#allocation6], 1 }
 0x136   :  { %466 = vsyncpa [#allocation4], 1 }

</bundles_post_ra>
